<compile_context>
chip_gen: v5e
topology: v5e:2x2
jax: 0.10.0
libtpu: 0.0.40
codegen_flags: <defaults>
</compile_context>

<pallas_src>
import functools

import jax
import jax.numpy as jnp
from jax import lax
from jax.experimental import pallas as pl
from jax.experimental.pallas import tpu as pltpu


# --------------------------------------------------------------------------------------
# helpers
# --------------------------------------------------------------------------------------
def _round_up(x, m):
    return ((x + m - 1) // m) * m


def _vmem_limit_bytes():
    """Scoped-VMEM limit sized from the actual chip (~3/4 of physical)."""
    try:
        cap = int(pltpu.get_tpu_info().vmem_capacity_bytes)
    except Exception:
        cap = 128 * 1024 * 1024
    return max(32 * 1024 * 1024, (cap * 3) // 4)


# --------------------------------------------------------------------------------------
# Pallas kernels
# --------------------------------------------------------------------------------------
def _conv_kernel(*refs, M2, Wp2, TN, n_tiles, epilogue, emit_stats):
    """Phase-split 4x4/stride-2 conv for one (batch, channel-tile) grid point.

    Inputs:  x_ref  (Minp, C4)   phase-split flattened input (bf16), whole image
             w_ref  (2, 2, C4, Coutp)  resident weight (bf16)
             [m_ref (M2, 1)       valid-column mask, only when emit_stats]
    Outputs: o_ref  (M2p, TN)    f32 conv output (rows = Hout*Wp2, garbage cols masked
                                 out of the stats and cropped outside)
             [s_ref/q_ref (1, TN) per-(b, tile) sum / sumsq, only when emit_stats]
    """
    if emit_stats:
        x_ref, w_ref, m_ref, o_ref, s_ref, q_ref = refs
    else:
        x_ref, w_ref, o_ref = refs

    M2p = o_ref.shape[0]

    if n_tiles > 1:
        col0 = pl.multiple_of(pl.program_id(1) * TN, 128)

    first = True
    for sy in (0, 1):
        for sx in (0, 1):
            off = sy * Wp2 + sx                       # static row offset of this shift
            lhs = x_ref[off:off + M2, :]              # (M2, C4) bf16, contiguous rows
            if n_tiles > 1:
                rhs = w_ref[sy, sx, :, pl.ds(col0, TN)]
            else:
                rhs = w_ref[sy, sx]                   # (C4, TN) -- weight stays resident
            part = jnp.dot(lhs, rhs, preferred_element_type=jnp.float32)
            if first:                                 # accumulate directly into o_ref
                o_ref[:M2, :] = part
                first = False
            else:
                o_ref[:M2, :] = o_ref[:M2, :] + part

    if M2p > M2:                                      # zero any row padding
        o_ref[M2:, :] = jnp.zeros((M2p - M2, o_ref.shape[1]), jnp.float32)

    if epilogue == "tanh":                            # Cvi(after='Tanh')
        o_ref[:M2, :] = jnp.tanh(o_ref[:M2, :])
    elif epilogue == "sigmoid":                       # Cvi(after='sigmoid')
        o_ref[:M2, :] = jax.nn.sigmoid(o_ref[:M2, :])

    if emit_stats:                                    # fused BN / InstanceNorm statistics
        y = o_ref[:M2, :] * m_ref[...]                # mask wrap-around (invalid) columns
        s_ref[...] = jnp.sum(y, axis=0, keepdims=True)
        q_ref[...] = jnp.sum(y * y, axis=0, keepdims=True)


def _scale_shift_kernel(y_ref, sc_ref, sh_ref, o_ref):
    """Lane-dense per-(batch, channel) normalization apply: y = x*scale + shift."""
    o_ref[...] = y_ref[...] * sc_ref[...] + sh_ref[...]


# --------------------------------------------------------------------------------------
# BN / InstanceNorm finalize + apply
# --------------------------------------------------------------------------------------
def _norm_apply(y, sums, ssq, count, mode, TR, vmem):
    """y: (B, M2p, Coutp) f32.  sums/ssq: (B, 1, Coutp) masked per-instance stats."""
    B, M2p, Coutp = y.shape
    eps = 1e-5
    n = jnp.float32(count)

    if mode == "BN":                                  # stats over (B, H, W) per channel
        tot_s = jnp.sum(sums, axis=0, keepdims=True)
        tot_q = jnp.sum(ssq, axis=0, keepdims=True)
        mean = tot_s / (n * B)
        var = tot_q / (n * B) - mean * mean
        mean = jnp.broadcast_to(mean, (B, 1, Coutp))
        var = jnp.broadcast_to(var, (B, 1, Coutp))
    else:                                             # 'LN' = InstanceNorm: per (b, c)
        mean = sums / n
        var = ssq / n - mean * mean
    var = jnp.maximum(var, 0.0)                       # guard fp cancellation
    scale = lax.rsqrt(var + eps)                      # affine weight = 1
    shift = -mean * scale                             # affine bias   = 0

    return pl.pallas_call(
        _scale_shift_kernel,
        grid_spec=pltpu.PrefetchScalarGridSpec(
            num_scalar_prefetch=0,
            grid=(B, M2p // TR),
            in_specs=[pl.BlockSpec((None, TR, Coutp), lambda b, t: (b, t, 0)),
                      pl.BlockSpec((None, 1, Coutp), lambda b, t: (b, 0, 0)),
                      pl.BlockSpec((None, 1, Coutp), lambda b, t: (b, 0, 0))],
            out_specs=pl.BlockSpec((None, TR, Coutp), lambda b, t: (b, t, 0))),
        out_shape=jax.ShapeDtypeStruct((B, M2p, Coutp), jnp.float32),
        compiler_params=pltpu.CompilerParams(
            dimension_semantics=("parallel", "parallel"),
            vmem_limit_bytes=vmem),
    )(y, scale, shift)


# --------------------------------------------------------------------------------------
# Cvi forward
# --------------------------------------------------------------------------------------
def cvi_forward(w, x, *, before=None, after=False,
                stride=2, padding=1, dilation=1, groups=1):
    """Cvi.forward: y = after(conv(before(x))).  NCHW float32 in / out, bias=False."""
    B, Cin, H, W = x.shape
    Cout, Cin_w, kh, kw = w.shape
    assert Cin_w == Cin
    if groups != 1 or stride != 2 or dilation != 1 or kh != 4 or kw != 4:
        # TODO(synk): only the Cvi defaults (k=4, s=2, d=1, groups=1) are lowered here.
        raise NotImplementedError("Cvi Pallas kernel supports k=4, stride=2, dilation=1, groups=1")

    # ---- "before" activation (fuses with the phase-split layout pass below).
    if before == "ReLU":
        x = jnp.maximum(x, 0.0)
    elif before == "LReLU":
        x = jnp.where(x >= 0.0, x, 0.2 * x)

    Hout = (H + 2 * padding - 4) // 2 + 1
    Wout = (W + 2 * padding - 4) // 2 + 1

    # ---- pad / NHWC / bf16 / 2x2 phase-split / flatten: ONE fused XLA layout pass over
    #      the input (no 4x im2col expansion).  xq[b, i*Wp2+j, (py*2+px)*Cin+c] =
    #      x_pad[b, 2i+py, 2j+px, c].
    Hp, Wp = H + 2 * padding, W + 2 * padding
    ph, pw = Hp % 2, Wp % 2
    xh = jnp.pad(x.transpose(0, 2, 3, 1),
                 ((0, 0), (padding, padding + ph), (padding, padding + pw), (0, 0))
                 ).astype(jnp.bfloat16)
    Hp2, Wp2 = (Hp + ph) // 2, (Wp + pw) // 2
    C4 = 4 * Cin
    xq = (xh.reshape(B, Hp2, 2, Wp2, 2, Cin)
            .transpose(0, 1, 3, 2, 4, 5)
            .reshape(B, Hp2 * Wp2, C4))

    M2 = Hout * Wp2                                   # matmul rows (width-padded by 1 col)
    Minp = _round_up(max(M2 + Wp2 + 1, Hp2 * Wp2), 8)
    xf = jnp.pad(xq, ((0, 0), (0, Minp - Hp2 * Wp2), (0, 0)))

    # ---- weight -> W2[sy, sx, (py*2+px)*Cin + c, co] = w[co, c, 2*sy+py, 2*sx+px]
    Coutp = _round_up(Cout, 128)
    TN = min(512, Coutp)
    n_tiles = Coutp // TN
    w2 = (w.transpose(2, 3, 1, 0)                     # (ky, kx, Cin, Cout)
            .reshape(2, 2, 2, 2, Cin, Cout)           # (sy, py, sx, px, c, co)
            .transpose(0, 2, 1, 3, 4, 5)              # (sy, sx, py, px, c, co)
            .reshape(2, 2, C4, Cout))
    w2 = jnp.pad(w2, ((0, 0), (0, 0), (0, 0), (0, Coutp - Cout))).astype(jnp.bfloat16)

    # ---- output row padding / streaming tile size for the apply kernel
    if M2 <= 512:
        M2p = _round_up(M2, 8)
        TR = M2p
    else:
        M2p = _round_up(M2, 512)
        TR = 512

    epilogue = {"Tanh": "tanh", "sigmoid": "sigmoid"}.get(after, None)
    emit_stats = after in ("BN", "LN")
    vmem = _vmem_limit_bytes()

    kern = functools.partial(_conv_kernel, M2=M2, Wp2=Wp2, TN=TN,
                             n_tiles=n_tiles, epilogue=epilogue, emit_stats=emit_stats)

    x_spec = pl.BlockSpec((None, Minp, C4), lambda b, n: (b, 0, 0))
    w_spec = pl.BlockSpec((2, 2, C4, Coutp), lambda b, n: (0, 0, 0, 0))   # resident weight
    o_spec = pl.BlockSpec((None, M2p, TN), lambda b, n: (b, 0, n))
    cparams = pltpu.CompilerParams(dimension_semantics=("parallel", "parallel"),
                                   vmem_limit_bytes=vmem)

    if emit_stats:
        mask = (jnp.arange(M2) % Wp2 < Wout).astype(jnp.float32).reshape(M2, 1)
        m_spec = pl.BlockSpec((M2, 1), lambda b, n: (0, 0))
        st_spec = pl.BlockSpec((None, 1, TN), lambda b, n: (b, 0, n))
        y, sums, ssq = pl.pallas_call(
            kern,
            grid_spec=pltpu.PrefetchScalarGridSpec(
                num_scalar_prefetch=0,
                grid=(B, n_tiles),
                in_specs=[x_spec, w_spec, m_spec],
                out_specs=[o_spec, st_spec, st_spec]),
            out_shape=(jax.ShapeDtypeStruct((B, M2p, Coutp), jnp.float32),
                       jax.ShapeDtypeStruct((B, 1, Coutp), jnp.float32),
                       jax.ShapeDtypeStruct((B, 1, Coutp), jnp.float32)),
            compiler_params=cparams,
        )(xf, w2, mask)
        y = _norm_apply(y, sums, ssq, Hout * Wout, after, TR, vmem)
    else:
        y = pl.pallas_call(
            kern,
            grid_spec=pltpu.PrefetchScalarGridSpec(
                num_scalar_prefetch=0,
                grid=(B, n_tiles),
                in_specs=[x_spec, w_spec],
                out_specs=o_spec),
            out_shape=jax.ShapeDtypeStruct((B, M2p, Coutp), jnp.float32),
            compiler_params=cparams,
        )(xf, w2)

    # ---- single fused crop + NCHW transpose at the module boundary.
    y = (y[:, :M2, :Cout]
         .reshape(B, Hout, Wp2, Cout)[:, :, :Wout, :]
         .transpose(0, 3, 1, 2))
    return y


# --------------------------------------------------------------------------------------
# Pure-JAX reference (conv inputs rounded to bf16 to match the MXU input precision)
# --------------------------------------------------------------------------------------
def cvi_reference(w, x, *, before=None, after=False,
                  stride=2, padding=1, dilation=1):
    if before == "ReLU":
        x = jnp.maximum(x, 0.0)
    elif before == "LReLU":
        x = jnp.where(x >= 0.0, x, 0.2 * x)
    xq = x.astype(jnp.bfloat16).astype(jnp.float32)
    wq = w.astype(jnp.bfloat16).astype(jnp.float32)
    y = lax.conv_general_dilated(
        xq, wq, (stride, stride), ((padding, padding), (padding, padding)),
        rhs_dilation=(dilation, dilation),
        dimension_numbers=("NCHW", "OIHW", "NCHW"),
        precision=lax.Precision.HIGHEST)
    if after == "Tanh":
        y = jnp.tanh(y)
    elif after == "sigmoid":
        y = jax.nn.sigmoid(y)
    elif after == "BN":          # training-mode batch stats, weight=1, bias=0
        m = jnp.mean(y, axis=(0, 2, 3), keepdims=True)
        v = jnp.var(y, axis=(0, 2, 3), keepdims=True)
        y = (y - m) * lax.rsqrt(v + 1e-5)
    elif after == "LN":          # nn.InstanceNorm2d(affine=False)
        m = jnp.mean(y, axis=(2, 3), keepdims=True)
        v = jnp.var(y, axis=(2, 3), keepdims=True)
        y = (y - m) * lax.rsqrt(v + 1e-5)
    return y


# --------------------------------------------------------------------------------------
# Main
# --------------------------------------------------------------------------------------
if __name__ == "__main__":
    key = jax.random.PRNGKey(0)
    kx, kw_key = jax.random.split(key)
    B, Cin, H, W, Cout = 2, 4, 16, 16, 8
    x = jax.random.normal(kx, (B, Cin, H, W), jnp.float32)
    # weights_init('gaussian'): N(0, 0.02); Cvi default: kernel 4, stride 2, pad 1, no bias.
    w = 0.02 * jax.random.normal(kw_key, (Cout, Cin, 4, 4), jnp.float32)

    fwd = jax.jit(cvi_forward,
                  static_argnames=("before", "after", "stride", "padding",
                                   "dilation", "groups"))

    configs = [
        (None, False),         # plain conv (Cv0-style)
        ("LReLU", "BN"),       # encoder block
        ("ReLU", "LN"),        # InstanceNorm variant
        ("LReLU", "Tanh"),     # decoder output
        (None, "sigmoid"),
    ]
    for before, after in configs:
        out = jax.block_until_ready(fwd(w, x, before=before, after=after))
        ref = cvi_reference(w, x, before=before, after=after)
        assert out.shape == (B, Cout, H // 2, W // 2) and out.dtype == jnp.float32
        assert bool(jnp.all(jnp.isfinite(out)))
        err = float(jnp.max(jnp.abs(out - ref)))
        assert err < 1e-2, (before, after, err)
    print("KERNEL_OK")
</pallas_src>

<mosaic_0001>
module attributes {stable_mosaic.version = 11 : i64} {
  func.func @_conv_kernel(%arg0: i32, %arg1: i32, %arg2: memref<1x88x16xbf16, #tpu.memory_space<vmem>>, %arg3: memref<2x2x16x128xbf16, #tpu.memory_space<vmem>>, %arg4: memref<1x72x128xf32, #tpu.memory_space<vmem>>) attributes {dimension_semantics = [#tpu.dimension_semantics<parallel>, #tpu.dimension_semantics<parallel>], iteration_bounds = array<i64: 2, 1>, scalar_prefetch = 0 : i64, scratch_operands = 0 : i64, tpu.core_type = #tpu.core_type<tc>, window_params = [{transform_indices = @transform_0, window_bounds = array<i64: 1, 88, 16>}, {pipeline_mode = #tpu.pipeline_mode<synchronous>, transform_indices = @transform_1, window_bounds = array<i64: 2, 2, 16, 128>}, {transform_indices = @transform_2, window_bounds = array<i64: 1, 72, 128>}]} {
    %c0 = arith.constant 0 : index
    %c0_0 = arith.constant 0 : index
    %c0_1 = arith.constant 0 : index
    %0 = vector.load %arg2[%c0, %c0_0, %c0_1] : memref<1x88x16xbf16, #tpu.memory_space<vmem>>, vector<1x72x16xbf16>
    %1 = vector.shape_cast %0 : vector<1x72x16xbf16> to vector<72x16xbf16>
    %c0_2 = arith.constant 0 : index
    %c0_3 = arith.constant 0 : index
    %c0_4 = arith.constant 0 : index
    %c0_5 = arith.constant 0 : index
    %2 = vector.load %arg3[%c0_2, %c0_3, %c0_4, %c0_5] : memref<2x2x16x128xbf16, #tpu.memory_space<vmem>>, vector<1x1x16x128xbf16>
    %3 = vector.shape_cast %2 : vector<1x1x16x128xbf16> to vector<16x128xbf16>
    %cst = arith.constant dense<0.000000e+00> : vector<72x128xf32>
    %4 = tpu.matmul %1, %3, %cst {dimension_numbers = #tpu.dot_dimension_numbers<[1], [0], [0], [1], [0, 0, 1, 1], [], []>} : vector<72x16xbf16>, vector<16x128xbf16>, vector<72x128xf32> -> vector<72x128xf32>
    %c0_6 = arith.constant 0 : index
    %c0_7 = arith.constant 0 : index
    %c0_8 = arith.constant 0 : index
    %5 = vector.load %arg4[%c0_6, %c0_7, %c0_8] : memref<1x72x128xf32, #tpu.memory_space<vmem>>, vector<1x72x128xf32>
    %6 = vector.shape_cast %5 : vector<1x72x128xf32> to vector<72x128xf32>
    %7 = vector.shape_cast %4 : vector<72x128xf32> to vector<1x72x128xf32>
    tpu.vector_store %arg4[%c0_6, %c0_7, %c0_8], %7 {strides = array<i32>} : memref<1x72x128xf32, #tpu.memory_space<vmem>>, vector<1x72x128xf32>,
    %c0_9 = arith.constant 0 : index
    %c1 = arith.constant 1 : index
    %c0_10 = arith.constant 0 : index
    %8 = vector.load %arg2[%c0_9, %c1, %c0_10] : memref<1x88x16xbf16, #tpu.memory_space<vmem>>, vector<1x72x16xbf16>
    %9 = vector.shape_cast %8 : vector<1x72x16xbf16> to vector<72x16xbf16>
    %c0_11 = arith.constant 0 : index
    %c1_12 = arith.constant 1 : index
    %c0_13 = arith.constant 0 : index
    %c0_14 = arith.constant 0 : index
    %10 = vector.load %arg3[%c0_11, %c1_12, %c0_13, %c0_14] : memref<2x2x16x128xbf16, #tpu.memory_space<vmem>>, vector<1x1x16x128xbf16>
    %11 = vector.shape_cast %10 : vector<1x1x16x128xbf16> to vector<16x128xbf16>
    %cst_15 = arith.constant dense<0.000000e+00> : vector<72x128xf32>
    %12 = tpu.matmul %9, %11, %cst_15 {dimension_numbers = #tpu.dot_dimension_numbers<[1], [0], [0], [1], [0, 0, 1, 1], [], []>} : vector<72x16xbf16>, vector<16x128xbf16>, vector<72x128xf32> -> vector<72x128xf32>
    %c0_16 = arith.constant 0 : index
    %c0_17 = arith.constant 0 : index
    %c0_18 = arith.constant 0 : index
    %13 = vector.load %arg4[%c0_16, %c0_17, %c0_18] : memref<1x72x128xf32, #tpu.memory_space<vmem>>, vector<1x72x128xf32>
    %14 = vector.shape_cast %13 : vector<1x72x128xf32> to vector<72x128xf32>
    %15 = arith.addf %14, %12 : vector<72x128xf32>
    %c0_19 = arith.constant 0 : index
    %c0_20 = arith.constant 0 : index
    %c0_21 = arith.constant 0 : index
    %16 = vector.load %arg4[%c0_19, %c0_20, %c0_21] : memref<1x72x128xf32, #tpu.memory_space<vmem>>, vector<1x72x128xf32>
    %17 = vector.shape_cast %16 : vector<1x72x128xf32> to vector<72x128xf32>
    %18 = vector.shape_cast %15 : vector<72x128xf32> to vector<1x72x128xf32>
    tpu.vector_store %arg4[%c0_19, %c0_20, %c0_21], %18 {strides = array<i32>} : memref<1x72x128xf32, #tpu.memory_space<vmem>>, vector<1x72x128xf32>,
    %c0_22 = arith.constant 0 : index
    %c9 = arith.constant 9 : index
    %c0_23 = arith.constant 0 : index
    %19 = vector.load %arg2[%c0_22, %c9, %c0_23] : memref<1x88x16xbf16, #tpu.memory_space<vmem>>, vector<1x72x16xbf16>
    %20 = vector.shape_cast %19 : vector<1x72x16xbf16> to vector<72x16xbf16>
    %c1_24 = arith.constant 1 : index
    %c0_25 = arith.constant 0 : index
    %c0_26 = arith.constant 0 : index
    %c0_27 = arith.constant 0 : index
    %21 = vector.load %arg3[%c1_24, %c0_25, %c0_26, %c0_27] : memref<2x2x16x128xbf16, #tpu.memory_space<vmem>>, vector<1x1x16x128xbf16>
    %22 = vector.shape_cast %21 : vector<1x1x16x128xbf16> to vector<16x128xbf16>
    %cst_28 = arith.constant dense<0.000000e+00> : vector<72x128xf32>
    %23 = tpu.matmul %20, %22, %cst_28 {dimension_numbers = #tpu.dot_dimension_numbers<[1], [0], [0], [1], [0, 0, 1, 1], [], []>} : vector<72x16xbf16>, vector<16x128xbf16>, vector<72x128xf32> -> vector<72x128xf32>
    %c0_29 = arith.constant 0 : index
    %c0_30 = arith.constant 0 : index
    %c0_31 = arith.constant 0 : index
    %24 = vector.load %arg4[%c0_29, %c0_30, %c0_31] : memref<1x72x128xf32, #tpu.memory_space<vmem>>, vector<1x72x128xf32>
    %25 = vector.shape_cast %24 : vector<1x72x128xf32> to vector<72x128xf32>
    %26 = arith.addf %25, %23 : vector<72x128xf32>
    %c0_32 = arith.constant 0 : index
    %c0_33 = arith.constant 0 : index
    %c0_34 = arith.constant 0 : index
    %27 = vector.load %arg4[%c0_32, %c0_33, %c0_34] : memref<1x72x128xf32, #tpu.memory_space<vmem>>, vector<1x72x128xf32>
    %28 = vector.shape_cast %27 : vector<1x72x128xf32> to vector<72x128xf32>
    %29 = vector.shape_cast %26 : vector<72x128xf32> to vector<1x72x128xf32>
    tpu.vector_store %arg4[%c0_32, %c0_33, %c0_34], %29 {strides = array<i32>} : memref<1x72x128xf32, #tpu.memory_space<vmem>>, vector<1x72x128xf32>,
    %c0_35 = arith.constant 0 : index
    %c10 = arith.constant 10 : index
    %c0_36 = arith.constant 0 : index
    %30 = vector.load %arg2[%c0_35, %c10, %c0_36] : memref<1x88x16xbf16, #tpu.memory_space<vmem>>, vector<1x72x16xbf16>
    %31 = vector.shape_cast %30 : vector<1x72x16xbf16> to vector<72x16xbf16>
    %c1_37 = arith.constant 1 : index
    %c1_38 = arith.constant 1 : index
    %c0_39 = arith.constant 0 : index
    %c0_40 = arith.constant 0 : index
    %32 = vector.load %arg3[%c1_37, %c1_38, %c0_39, %c0_40] : memref<2x2x16x128xbf16, #tpu.memory_space<vmem>>, vector<1x1x16x128xbf16>
    %33 = vector.shape_cast %32 : vector<1x1x16x128xbf16> to vector<16x128xbf16>
    %cst_41 = arith.constant dense<0.000000e+00> : vector<72x128xf32>
    %34 = tpu.matmul %31, %33, %cst_41 {dimension_numbers = #tpu.dot_dimension_numbers<[1], [0], [0], [1], [0, 0, 1, 1], [], []>} : vector<72x16xbf16>, vector<16x128xbf16>, vector<72x128xf32> -> vector<72x128xf32>
    %c0_42 = arith.constant 0 : index
    %c0_43 = arith.constant 0 : index
    %c0_44 = arith.constant 0 : index
    %35 = vector.load %arg4[%c0_42, %c0_43, %c0_44] : memref<1x72x128xf32, #tpu.memory_space<vmem>>, vector<1x72x128xf32>
    %36 = vector.shape_cast %35 : vector<1x72x128xf32> to vector<72x128xf32>
    %37 = arith.addf %36, %34 : vector<72x128xf32>
    %c0_45 = arith.constant 0 : index
    %c0_46 = arith.constant 0 : index
    %c0_47 = arith.constant 0 : index
    %38 = vector.load %arg4[%c0_45, %c0_46, %c0_47] : memref<1x72x128xf32, #tpu.memory_space<vmem>>, vector<1x72x128xf32>
    %39 = vector.shape_cast %38 : vector<1x72x128xf32> to vector<72x128xf32>
    %40 = vector.shape_cast %37 : vector<72x128xf32> to vector<1x72x128xf32>
    tpu.vector_store %arg4[%c0_45, %c0_46, %c0_47], %40 {strides = array<i32>} : memref<1x72x128xf32, #tpu.memory_space<vmem>>, vector<1x72x128xf32>,
    return
  }
  func.func @transform_0(%arg0: i32, %arg1: i32) -> (i32, i32, i32) {
    %c0_i32 = arith.constant 0 : i32
    %c0_i32_0 = arith.constant 0 : i32
    %c0_i32_1 = arith.constant 0 : i32
    return %arg0, %c0_i32, %c0_i32_0 : i32, i32, i32
  }
  func.func @transform_1(%arg0: i32, %arg1: i32) -> (i32, i32, i32, i32) {
    %c0_i32 = arith.constant 0 : i32
    %c0_i32_0 = arith.constant 0 : i32
    %c0_i32_1 = arith.constant 0 : i32
    %c0_i32_2 = arith.constant 0 : i32
    %c0_i32_3 = arith.constant 0 : i32
    return %c0_i32, %c0_i32_0, %c0_i32_1, %c0_i32_2 : i32, i32, i32, i32
  }
  func.func @transform_2(%arg0: i32, %arg1: i32) -> (i32, i32, i32) {
    %c0_i32 = arith.constant 0 : i32
    %c0_i32_0 = arith.constant 0 : i32
    return %arg0, %c0_i32, %arg1 : i32, i32, i32
  }
}

</mosaic_0001>

<bundles_post_ra>
// kernel: cvi_forward.1
= control target key start
LH: loop header
LB: loop body
LE: loop exit
PB: predicated region body
PF: predicated region fallthrough
CT: control target
= control target key end

     0   :  { %s1001_s9 = smov 0   ;;  %s1003_s10 = smov 0   ;;  %s1119_s0 = inlined_call_operand.vmem [shape: bf16[2,88,16], index: 0, kind: input, shape index: {}]   ;;  %s1120_s1 = inlined_call_operand.vmem [shape: bf16[2,2,16,128], index: 1, kind: input, shape index: {}]   ;;  %s1121_s2 = inlined_call_operand.vmem [shape: f32[2,72,128], index: 2, kind: output, shape index: {}]  }
   0x1   :  { %s1005_s11 = smov 0  }
   0x2 LB: > { %s24_s12 = sadd.s32 1, %s980_s10  ;;  %p790_p0 = scmp.ge.s32.totalorder %s984_s11, 1  ;;  %s984_s11 = sphi %s1005_s11, %s12_s11   ;;  %s980_s10 = sphi %s1003_s10, %s1123_s10   ;;  %s976_s9 = sphi %s1001_s9, %s1122_s9  }
   0x3   : > { %p26_p1 = scmp.ge.s32.totalorder %s24_s12, 2  ;;  %p126_p2 = scmp.lt.s32.totalorder %s984_s11, 3 }
   0x5   : > { %s1125_s12 = smov (%p26_p1, %s24_s12), 0  ;;  %p127_p3 = pnand %p790_p0, %p126_p2 }
   0x6   : > { %p151_p4 = scmp.lt.s32.totalorder (!%p127_p3), %s976_s9, 1 }
   0x7   : > { %130 = sbr.rel (%p127_p3) target bundleno = 230 (0xe6), region = 28 }
   0xc   : > { %v917_v0 = vld [vmem:[%s1120_s1] sm:$0xff]  ;;  %v923_v1 = vld [vmem:[%s1120_s1 + $0x8] sm:$0xff]  ;;  %v929_v2 = vld [vmem:[%s1120_s1 + $0x10] sm:$0xff]  ;;  %s1127_s9 = smov (!%p151_p4, %s976_s9), 1  ;;  %vm205_vm0 = vcmask 130048   ;;  %vm618_vm1 = vcmask 1046528  }
   0xd   : > { %v935_v3 = vld [vmem:[%s1120_s1 + $0x18] sm:$0xff]  ;;  %228 = vmatpush.bf16.msra.mxu0 %v917_v0  ;;  %369 = vmatpush.bf16.msra.mxu1 %v923_v1  ;;  %s936_s21 = smul.u32 44, %s1127_s9  ;;  %vm301_vm2 = vsmask.f32 7424 }
   0xe   : > { %527 = vmatpush.bf16.msra.mxu2 %v929_v2  ;;  %656 = vmatpush.bf16.msra.mxu3 %v935_v3  ;;  %s937_s25 = smul.u32 72, %s1127_s9 }
   0xf   : > { %s1037_s24 = scalar_lea.vmem %s1119_s0, %s936_s21 }
  0x10   : > { %v913_v4 = vld [vmem:[%s1037_s24] sm:$0xff]  ;;  %v919_v6 = vld [vmem:[%s1037_s24 + $0x8] sm:$0xff]  ;;  %v920_v30 = vld [vmem:[%s1037_s24 + $0x10] sm:$0xff]  ;;  %s1099_s28 = scalar_lea.vmem %s1121_s2, %s937_s25 }
  0x11   : > { %v918_v5 = vld [vmem:[%s1037_s24] sm:$0xff]  ;;  %v925_v8 = vld [vmem:[%s1037_s24 + $0xc] sm:$0xff]  ;;  %813 = vmatmul.msk.bf16.vlgmr.msra.gmra.mxu0 %vm205_vm0, %v913_v4  ;;  %v310_v12 = vshll.u32 %v919_v6, 16  ;;  %v930_v13 = vld [vmem:[%s1037_s24 + $0x4] sm:$0xf0]  ;;  %v314_v34 = vshrl.u32 %v919_v6, 16 }
  0x12   : > { %v924_v7 = vld [vmem:[%s1037_s24 + $0x4] sm:$0xff]  ;;  %v303_v10 = vshrl.u32 %v918_v5, 16  ;;  %v305_v11 = vshll.u32 %v918_v5, 16  ;;  %v931_v14 = vld [vmem:[%s1037_s24 + $0xc] sm:$0xff]  ;;  %v468_v17 = vshll.u32 %v925_v8, 16  ;;  %v926_v31 = vld [vmem:[%s1037_s24 + $0x14] sm:$0xff] }
  0x13   : > { %v884_v9 = vld [vmem:[%s1037_s24 + $0x4] sm:$0xe]  ;;  %v461_v15 = vshrl.u32 %v924_v7, 16  ;;  %v463_v16 = vshll.u32 %v924_v7, 16  ;;  %v312_v20 = vrot.slane %v310_v12, 1  ;;  %v620_v21 = vrot.slane %v931_v14, 1 }
  0x14   : > { %v885_v18 = vor.u32 %v930_v13, %v884_v9  ;;  %v307_v19 = vrot.slane %v305_v11, 1  ;;  %v470_v23 = vrot.slane %v468_v17, 1  ;;  %v932_v32 = vld [vmem:[%s1037_s24 + $0x14] sm:$0xff]  ;;  %v914_v33 = vld [vmem:[%s1037_s24 + $0x8] sm:$0xff]  ;;  %v318_v35 = vshll.u32 %v920_v30, 16  ;;  %v927_v47 = vld [vmem:[%s1037_s24 + $0x1c] sm:$0xff] }
  0x15   : > { %v465_v22 = vrot.slane %v463_v16, 1  ;;  %v472_v36 = vshrl.u32 %v925_v8, 16  ;;  %v476_v37 = vshll.u32 %v926_v31, 16  ;;  %v622_v38 = vrot.slane %v932_v32, 1  ;;  %v921_v46 = vld [vmem:[%s1037_s24 + $0x18] sm:$0xff]  ;;  %v915_v49 = vld [vmem:[%s1037_s24 + $0x10] sm:$0xff] }
  0x16   : > { %v619_v24 = vrot.slane %v885_v18, 1  ;;  %v308_v25 = vor.u32 %v307_v19, %v303_v10  ;;  %v316_v39 = vor.u32 %v314_v34, %v312_v20  ;;  %v320_v40 = vrot.slane %v318_v35, 1  ;;  %v933_v48 = vld [vmem:[%s1037_s24 + $0x1c] sm:$0xff]  ;;  %v922_v63 = vld [vmem:[%s1037_s24 + $0x20] sm:$0x10] }
  0x17   : > { %v466_v26 = vor.u32 %v465_v22, %v461_v15  ;;  %v474_v41 = vor.u32 %v472_v36, %v470_v23  ;;  %v478_v42 = vrot.slane %v476_v37, 1  ;;  %v623_v43 = vsel %vm618_vm1, %v620_v21, %v622_v38  ;;  %v838_v62 = vld [vmem:[%s1037_s24 + $0x20] sm:$0xf]  ;;  %v869_v0 = vld [vmem:[%s1037_s24 + $0x24] sm:$0xf]  ;;  %v916_v7 = vld [vmem:[%s1037_s24 + $0x18] sm:$0xff] }
  0x18   : > { %v621_v27 = vsel %vm618_vm1, %v619_v24, %v620_v21  ;;  %v313_v28 = vsel %vm301_vm2, %v308_v25, %v312_v20  ;;  %v321_v44 = vsel %vm301_vm2, %v316_v39, %v320_v40  ;;  %v322_v50 = vshrl.u32 %v920_v30, 16  ;;  %v928_v1 = vld [vmem:[%s1037_s24 + $0x24] sm:$0x10]  ;;  %v900_v3 = vld [vmem:[%s1037_s24 + $0x24] sm:$0xf] }
  0x19   : > { %906 = vmatmul.msk.bf16.vlgmr.msra.gmra.mxu3 %vm205_vm0, %v621_v27  ;;  %844 = vmatmul.msk.bf16.vlgmr.msra.gmra.mxu1 %vm205_vm0, %v313_v28  ;;  %v471_v29 = vsel %vm301_vm2, %v466_v26, %v470_v23  ;;  %v479_v45 = vsel %vm301_vm2, %v474_v41, %v478_v42  ;;  %v326_v51 = vshll.u32 %v921_v46, 16  ;;  %v480_v52 = vshrl.u32 %v926_v31, 16  ;;  %v934_v4 = vld [vmem:[%s1037_s24 + $0x24] sm:$0x10]  ;;  %v173_v20 = vld [vmem:[%s1037_s24 + $0x20] sm:$0xf] }
  0x1a   : > { %875 = vmatmul.msk.bf16.vlgmr.msra.gmra.mxu2 %vm205_vm0, %v471_v29  ;;  %v484_v53 = vshll.u32 %v927_v47, 16  ;;  %v624_v54 = vrot.slane %v933_v48, 1  ;;  %v324_v55 = vor.u32 %v322_v50, %v320_v40  ;;  %v839_v2 = vor.u32 %v922_v63, %v838_v62 }
  0x1b   : > { %v328_v56 = vrot.slane %v326_v51, 1  ;;  %v482_v57 = vor.u32 %v480_v52, %v478_v42  ;;  %v870_v5 = vor.u32 %v928_v1, %v869_v0  ;;  %v901_v6 = vor.u32 %v934_v4, %v900_v3 }
  0x1c   : > { %v486_v58 = vrot.slane %v484_v53, 1  ;;  %v625_v59 = vsel %vm618_vm1, %v622_v38, %v624_v54  ;;  %v330_v8 = vshrl.u32 %v921_v46, 16  ;;  %v334_v9 = vshll.u32 %v839_v2, 16 }
  0x1d   : > { %v329_v60 = vsel %vm301_vm2, %v324_v55, %v328_v56  ;;  %v488_v10 = vshrl.u32 %v927_v47, 16  ;;  %v492_v11 = vshll.u32 %v870_v5, 16  ;;  %v626_v12 = vrot.slane %v901_v6, 1 }
  0x1e   : > { %v487_v61 = vsel %vm301_vm2, %v482_v57, %v486_v58  ;;  %v332_v13 = vor.u32 %v330_v8, %v328_v56  ;;  %v336_v14 = vrot.slane %v334_v9, 1  ;;  %v193_v21 = vunpack.c.l.b16 %v173_v20 }
  0x1f   : > { %v490_v15 = vor.u32 %v488_v10, %v486_v58  ;;  %v494_v16 = vrot.slane %v492_v11, 1  ;;  %v627_v17 = vsel %vm618_vm1, %v624_v54, %v626_v12  ;;  %v338_v23 = vshrl.u32 %v839_v2, 16 }
  0x20   : > { %v337_v18 = vsel %vm301_vm2, %v332_v13, %v336_v14  ;;  %v198_v22 = vpack.c.b16 %v193_v21, %v193_v21  ;;  %v496_v24 = vshrl.u32 %v870_v5, 16 }
  0x21   : > { %814 = vmatmul.msk.bf16.gmra.mxu0 %vm205_vm0, %v914_v33  ;;  %v495_v19 = vsel %vm301_vm2, %v490_v15, %v494_v16  ;;  %v340_v25 = vor.u32 %v338_v23, %v336_v14 }
  0x22   : > { %v498_v26 = vor.u32 %v496_v24, %v494_v16 }
  0x29   : > { %907 = vmatmul.msk.bf16.gmra.mxu3 %vm205_vm0, %v623_v43  ;;  %845 = vmatmul.msk.bf16.gmra.mxu1 %vm205_vm0, %v321_v44 }
  0x2a   : > { %876 = vmatmul.msk.bf16.gmra.mxu2 %vm205_vm0, %v479_v45 }
  0x31   : > { %815 = vmatmul.msk.bf16.gmra.mxu0 %vm205_vm0, %v915_v49 }
  0x39   : > { %908 = vmatmul.msk.bf16.gmra.mxu3 %vm205_vm0, %v625_v59  ;;  %846 = vmatmul.msk.bf16.gmra.mxu1 %vm205_vm0, %v329_v60 }
  0x3a   : > { %877 = vmatmul.msk.bf16.gmra.mxu2 %vm205_vm0, %v487_v61 }
  0x41   : > { %816 = vmatmul.msk.bf16.gmra.mxu0 %vm205_vm0, %v916_v7 }
  0x49   : > { %909 = vmatmul.msk.bf16.gmra.mxu3 %vm205_vm0, %v627_v17  ;;  %847 = vmatmul.msk.bf16.gmra.mxu1 %vm205_vm0, %v337_v18 }
  0x4a   : > { %878 = vmatmul.msk.bf16.gmra.mxu2 %vm205_vm0, %v495_v19 }
  0x51   : > { %817 = vmatmul.msk.bf16.gmra.mxu0 %vm205_vm0, %v198_v22 }
  0x59   : > { %910 = vmatmul.msk.bf16.gmra.mxu3 %vm205_vm0, %v626_v12  ;;  %848 = vmatmul.msk.bf16.gmra.mxu1 %vm205_vm0, %v340_v25 }
  0x5a   : > { %879 = vmatmul.msk.bf16.gmra.mxu2 %vm205_vm0, %v498_v26 }
  0x8e   : > { %v230_v27 = vpop.f32.mrf.mxu0 }
  0x96   : > { %v371_v28 = vpop.f32.mrf.mxu1  ;;  %v232_v29 = vpop.f32.mrf.mxu0 }
  0x97   : > { %v404_v30 = vadd.f32 %v371_v28, %v230_v27 }
  0x9c   : > { %v658_v31 = vpop.f32.mrf.mxu3 }
  0x9d   : > { %v529_v32 = vpop.f32.mrf.mxu2 }
  0x9e   : > { %v562_v33 = vadd.f32 %v529_v32, %v404_v30  ;;  %v373_v34 = vpop.f32.mrf.mxu1  ;;  %v235_v35 = vpop.f32.mrf.mxu0 }
  0x9f   : > { %v405_v38 = vadd.f32 %v373_v34, %v232_v29 }
  0xa0   : > { %v691_v36 = vadd.f32 %v658_v31, %v562_v33 }
  0xa2   : > { %700 = vst [vmem:[%s1099_s28] sm:$0xff] %v691_v36 }
  0xa4   : > { %v660_v37 = vpop.f32.mrf.mxu3 }
  0xa5   : > { %v531_v39 = vpop.f32.mrf.mxu2 }
  0xa6   : > { %v563_v40 = vadd.f32 %v531_v39, %v405_v38  ;;  %v376_v41 = vpop.f32.mrf.mxu1  ;;  %v237_v42 = vpop.f32.mrf.mxu0 }
  0xa7   : > { %v406_v44 = vadd.f32 %v376_v41, %v235_v35 }
  0xa8   : > { %v692_v43 = vadd.f32 %v660_v37, %v563_v40 }
  0xaa   : > { %701 = vst [vmem:[%s1099_s28 + $0x8] sm:$0xff] %v692_v43 }
  0xac   : > { %v663_v45 = vpop.f32.mrf.mxu3 }
  0xad   : > { %v534_v46 = vpop.f32.mrf.mxu2 }
  0xae   : > { %v564_v47 = vadd.f32 %v534_v46, %v406_v44  ;;  %v378_v48 = vpop.f32.mrf.mxu1  ;;  %v240_v49 = vpop.f32.mrf.mxu0 }
  0xaf   : > { %v407_v52 = vadd.f32 %v378_v48, %v237_v42 }
  0xb0   : > { %v693_v50 = vadd.f32 %v663_v45, %v564_v47 }
  0xb2   : > { %702 = vst [vmem:[%s1099_s28 + $0x10] sm:$0xff] %v693_v50 }
  0xb4   : > { %v665_v51 = vpop.f32.mrf.mxu3 }
  0xb5   : > { %v536_v53 = vpop.f32.mrf.mxu2 }
  0xb6   : > { %v565_v54 = vadd.f32 %v536_v53, %v407_v52  ;;  %v381_v55 = vpop.f32.mrf.mxu1  ;;  %v242_v56 = vpop.f32.mrf.mxu0 }
  0xb7   : > { %v408_v58 = vadd.f32 %v381_v55, %v240_v49 }
  0xb8   : > { %v694_v57 = vadd.f32 %v665_v51, %v565_v54 }
  0xba   : > { %703 = vst [vmem:[%s1099_s28 + $0x18] sm:$0xff] %v694_v57 }
  0xbc   : > { %v668_v59 = vpop.f32.mrf.mxu3 }
  0xbd   : > { %v539_v60 = vpop.f32.mrf.mxu2 }
  0xbe   : > { %v566_v61 = vadd.f32 %v539_v60, %v408_v58  ;;  %v383_v62 = vpop.f32.mrf.mxu1  ;;  %v245_v63 = vpop.f32.mrf.mxu0 }
  0xbf   : > { %v409_v2 = vadd.f32 %v383_v62, %v242_v56 }
  0xc0   : > { %v695_v0 = vadd.f32 %v668_v59, %v566_v61 }
  0xc2   : > { %704 = vst [vmem:[%s1099_s28 + $0x20] sm:$0xff] %v695_v0 }
  0xc4   : > { %v670_v1 = vpop.f32.mrf.mxu3 }
  0xc5   : > { %v541_v3 = vpop.f32.mrf.mxu2 }
  0xc6   : > { %v567_v4 = vadd.f32 %v541_v3, %v409_v2  ;;  %v386_v5 = vpop.f32.mrf.mxu1  ;;  %v247_v6 = vpop.f32.mrf.mxu0 }
  0xc7   : > { %v410_v8 = vadd.f32 %v386_v5, %v245_v63 }
  0xc8   : > { %v696_v7 = vadd.f32 %v670_v1, %v567_v4 }
  0xca   : > { %705 = vst [vmem:[%s1099_s28 + $0x28] sm:$0xff] %v696_v7 }
  0xcc   : > { %v673_v9 = vpop.f32.mrf.mxu3 }
  0xcd   : > { %v544_v10 = vpop.f32.mrf.mxu2 }
  0xce   : > { %v568_v11 = vadd.f32 %v544_v10, %v410_v8  ;;  %v388_v12 = vpop.f32.mrf.mxu1  ;;  %v250_v13 = vpop.f32.mrf.mxu0 }
  0xcf   : > { %v411_v16 = vadd.f32 %v388_v12, %v247_v6 }
  0xd0   : > { %v697_v14 = vadd.f32 %v673_v9, %v568_v11 }
  0xd2   : > { %706 = vst [vmem:[%s1099_s28 + $0x30] sm:$0xff] %v697_v14 }
  0xd4   : > { %v675_v15 = vpop.f32.mrf.mxu3 }
  0xd5   : > { %v546_v17 = vpop.f32.mrf.mxu2 }
  0xd6   : > { %v569_v18 = vadd.f32 %v546_v17, %v411_v16  ;;  %v391_v19 = vpop.f32.mrf.mxu1  ;;  %v252_v20 = vpop.f32.mrf.mxu0 }
  0xd7   : > { %v412_v22 = vadd.f32 %v391_v19, %v250_v13 }
  0xd8   : > { %v698_v21 = vadd.f32 %v675_v15, %v569_v18 }
  0xda   : > { %707 = vst [vmem:[%s1099_s28 + $0x38] sm:$0xff] %v698_v21 }
  0xdc   : > { %v678_v23 = vpop.f32.mrf.mxu3 }
  0xdd   : > { %v549_v24 = vpop.f32.mrf.mxu2 }
  0xde   : > { %v570_v25 = vadd.f32 %v549_v24, %v412_v22  ;;  %v393_v26 = vpop.f32.mrf.mxu1 }
  0xe0   : > { %v699_v27 = vadd.f32 %v678_v23, %v570_v25 }
  0xe2   : > { %708 = vst [vmem:[%s1099_s28 + $0x40] sm:$0xff] %v699_v27 }
  0xe4   : > { %v680_v28 = vpop.f32.mrf.mxu3 }
  0xe5   : > { %v551_v29 = vpop.f32.mrf.mxu2 }
  0xe6 PF: > { %s12_s11 = sadd.s32 1, %s984_s11   ;;  %s1122_s9 = smov %s980_s10 }
  0xe7   : > { %p9_p5 = scmp.ge.s32.totalorder %s12_s11, 4   ;;  %s1123_s10 = smov %s1125_s12 }
  0xe9   :  { %11 = sbr.rel (!%p9_p5) target bundleno = 2 (0x2), region = 61 }

</bundles_post_ra>
